<compile_context>
chip_gen: v7x
topology: tpu7x:2x2x1
jax: 0.10.0
libtpu: 0.0.40
codegen_flags: <defaults>
</compile_context>

<pallas_src>
import jax
import jax.numpy as jnp
from jax.experimental import pallas as pl
from jax.experimental.pallas import tpu as pltpu

LANE = 128             # lane width of a vreg
MAX_TILE_ROWS = 2048   # rows of 128 batch elems per grid step (2 MiB f32 of x)
MIN_GRID_STEPS = 8     # aim for >= 8 steps on big batches (v7x has 2 TCs)


def _round_up(a, m):
    return (a + m - 1) // m * m


def xor_mlp_kernel(params_ref, x_ref, o_ref):
    # params_ref: (9,) f32 in SMEM (pre-folded, see _fold_params):
    #   [w00h, w10h, b10h, w01h, w11h, b11h, a0, a1, c]
    # x_ref: (2, R, 128) f32 in VMEM -- x_ref[0]/x_ref[1] are the two input
    #        features, each a dense (R, 128) batch slab, R % 8 == 0.
    # o_ref: (R, 128) f32 in VMEM.
    w00h = params_ref[0]
    w10h = params_ref[1]
    b10h = params_ref[2]
    w01h = params_ref[3]
    w11h = params_ref[4]
    b11h = params_ref[5]
    a0 = params_ref[6]
    a1 = params_ref[7]
    c = params_ref[8]

    x0 = x_ref[0]          # (R, 128)
    x1 = x_ref[1]          # (R, 128)

    # Hidden layer: sigmoid(z) = 0.5*(tanh(z/2)+1).  The /2 is folded into the
    # (pre-halved) weights, so t_j = tanh(.) and h_j = 0.5*(t_j+1); the latter
    # affine is folded into the layer-2 constants below.
    t0 = jnp.tanh(x0 * w00h + x1 * w10h + b10h)
    t1 = jnp.tanh(x0 * w01h + x1 * w11h + b11h)

    # Output layer: y = sigmoid(h0*v0 + h1*v1 + b2) with the hidden affine and
    # the outer sigmoid's /2 pre-folded into (a0, a1, c).
    o_ref[...] = 0.5 * jnp.tanh(t0 * a0 + t1 * a1 + c) + 0.5


def _fold_params(w1, b1, w2, b2):
    """Fold the sigmoid affine constants into a flat 9-element param vector.

    Layer 1: sigmoid(x@W1+b1) = 0.5*(tanh(x@(W1/2)+b1/2)+1)  ->  halve W1, b1.
    Layer 2: h@W2+b2 = t@(W2/2) + (b2 + sum(W2)/2); the outer sigmoid adds
             another /2 inside tanh:  a = W2/4,  c = b2/2 + sum(W2)/4.
    """
    w1 = w1.astype(jnp.float32)
    b1 = b1.reshape(-1).astype(jnp.float32)
    v = w2.reshape(-1).astype(jnp.float32)
    c2 = b2.reshape(-1).astype(jnp.float32)[0]
    return jnp.stack([
        0.5 * w1[0, 0], 0.5 * w1[1, 0], 0.5 * b1[0],          # hidden unit 0
        0.5 * w1[0, 1], 0.5 * w1[1, 1], 0.5 * b1[1],          # hidden unit 1
        0.25 * v[0], 0.25 * v[1], 0.5 * c2 + 0.25 * (v[0] + v[1]),  # output
    ])


def xor_mlp_forward(x, w1, b1, w2, b2):
    """x: (B, 2) f32.  w1: (2,2), b1: (1,2), w2: (2,1), b2: (1,1), all (in, out)."""
    B = x.shape[0]

    # Tiling: batch -> (rows, 128) slab.  Rows per grid step are a multiple of
    # 8 (sublane-dense), capped at MAX_TILE_ROWS (2 MiB of x per step) and
    # chosen so large batches get >= MIN_GRID_STEPS parallel steps.
    rows_needed = max(1, _round_up(B, LANE) // LANE)
    tile_rows = min(
        MAX_TILE_ROWS,
        max(8, _round_up((rows_needed + MIN_GRID_STEPS - 1) // MIN_GRID_STEPS, 8)),
    )
    rows_padded = _round_up(rows_needed, tile_rows)
    bp = rows_padded * LANE
    grid = rows_padded // tile_rows

    # Feature-major, (8,128)-dense slab: (2, rows_padded, 128).
    # allow_input_fusion lets XLA fuse this pad/transpose/reshape into the
    # pallas input instead of a separate materialized HBM round trip.
    xpad = jnp.pad(x.astype(jnp.float32), ((0, bp - B), (0, 0)))      # (bp, 2)
    xt = xpad.T.reshape(2, rows_padded, LANE)

    params = _fold_params(w1, b1, w2, b2)   # (9,) f32, SMEM-resident

    out = pl.pallas_call(
        xor_mlp_kernel,
        out_shape=jax.ShapeDtypeStruct((rows_padded, LANE), jnp.float32),
        grid=(grid,),
        in_specs=[
            pl.BlockSpec(memory_space=pltpu.MemorySpace.SMEM),        # params
            pl.BlockSpec((2, tile_rows, LANE), lambda i: (0, i, 0)),  # x slab
        ],
        out_specs=pl.BlockSpec((tile_rows, LANE), lambda i: (i, 0)),
        compiler_params=pltpu.CompilerParams(
            dimension_semantics=("parallel",),     # batch tiles independent
            allow_input_fusion=[False, True],      # fuse the x transpose/pad
        ),
    )(params, xt)

    # Back to the PyTorch layout: (B, 1).
    return out.reshape(-1)[:B].reshape(B, 1)


def init_params(key):
    """Deterministic init mimicking PyTorch nn.Linear default:
    uniform(-1/sqrt(fan_in), 1/sqrt(fan_in)) for weight and bias."""
    k1, k2, k3, k4 = jax.random.split(key, 4)
    bound = 1.0 / jnp.sqrt(2.0)  # fan_in = 2 for both layers
    w1 = jax.random.uniform(k1, (2, 2), jnp.float32, -bound, bound)  # (in, out)
    b1 = jax.random.uniform(k2, (1, 2), jnp.float32, -bound, bound)
    w2 = jax.random.uniform(k3, (2, 1), jnp.float32, -bound, bound)  # (in, out)
    b2 = jax.random.uniform(k4, (1, 1), jnp.float32, -bound, bound)
    return w1, b1, w2, b2


def _reference(x, w1, b1, w2, b2):
    return jax.nn.sigmoid(jax.nn.sigmoid(x @ w1 + b1) @ w2 + b2)


if __name__ == "__main__":
    key = jax.random.PRNGKey(0)
    kx, kp = jax.random.split(key)
    w1, b1, w2, b2 = init_params(kp)

    # Small XOR-style batch (classic usage of this module).
    batch = 4
    x = jax.random.uniform(kx, (batch, 2), jnp.float32)
    out = jax.block_until_ready(xor_mlp_forward(x, w1, b1, w2, b2))
    ref = _reference(x, w1, b1, w2, b2)
    assert out.shape == (batch, 1)
    assert jnp.allclose(out, ref, atol=1e-5, rtol=1e-5)

    # Larger batch to exercise the multi-step "parallel" grid path.
    big = 4000
    xb = jax.random.uniform(jax.random.PRNGKey(1), (big, 2), jnp.float32)
    outb = jax.block_until_ready(xor_mlp_forward(xb, w1, b1, w2, b2))
    refb = _reference(xb, w1, b1, w2, b2)
    assert outb.shape == (big, 1)
    assert jnp.allclose(outb, refb, atol=1e-5, rtol=1e-5)

    print("KERNEL_OK")
</pallas_src>

<mosaic_0001>
module attributes {stable_mosaic.version = 11 : i64} {
  func.func @xor_mlp_kernel(%arg0: i32, %arg1: memref<9xf32, #tpu.memory_space<smem>>, %arg2: memref<2x8x128xf32, #tpu.memory_space<vmem>>, %arg3: memref<8x128xf32, #tpu.memory_space<vmem>>) attributes {dimension_semantics = [#tpu.dimension_semantics<parallel>], iteration_bounds = array<i64: 1>, scalar_prefetch = 0 : i64, scratch_operands = 0 : i64, tpu.core_type = #tpu.core_type<tc>, window_params = [{transform_indices = @transform_0, window_bounds = array<i64: 9>}, {transform_indices = @transform_1, window_bounds = array<i64: 2, 8, 128>}, {transform_indices = @transform_2, window_bounds = array<i64: 8, 128>}]} {
    %c0 = arith.constant 0 : index
    %0 = memref.load %arg1[%c0] : memref<9xf32, #tpu.memory_space<smem>>
    %c1 = arith.constant 1 : index
    %1 = memref.load %arg1[%c1] : memref<9xf32, #tpu.memory_space<smem>>
    %c2 = arith.constant 2 : index
    %2 = memref.load %arg1[%c2] : memref<9xf32, #tpu.memory_space<smem>>
    %c3 = arith.constant 3 : index
    %3 = memref.load %arg1[%c3] : memref<9xf32, #tpu.memory_space<smem>>
    %c4 = arith.constant 4 : index
    %4 = memref.load %arg1[%c4] : memref<9xf32, #tpu.memory_space<smem>>
    %c5 = arith.constant 5 : index
    %5 = memref.load %arg1[%c5] : memref<9xf32, #tpu.memory_space<smem>>
    %c6 = arith.constant 6 : index
    %6 = memref.load %arg1[%c6] : memref<9xf32, #tpu.memory_space<smem>>
    %c7 = arith.constant 7 : index
    %7 = memref.load %arg1[%c7] : memref<9xf32, #tpu.memory_space<smem>>
    %c8 = arith.constant 8 : index
    %8 = memref.load %arg1[%c8] : memref<9xf32, #tpu.memory_space<smem>>
    %c0_0 = arith.constant 0 : index
    %c0_1 = arith.constant 0 : index
    %c0_2 = arith.constant 0 : index
    %9 = vector.load %arg2[%c0_0, %c0_1, %c0_2] : memref<2x8x128xf32, #tpu.memory_space<vmem>>, vector<1x8x128xf32>
    %10 = vector.shape_cast %9 : vector<1x8x128xf32> to vector<8x128xf32>
    %c1_3 = arith.constant 1 : index
    %c0_4 = arith.constant 0 : index
    %c0_5 = arith.constant 0 : index
    %11 = vector.load %arg2[%c1_3, %c0_4, %c0_5] : memref<2x8x128xf32, #tpu.memory_space<vmem>>, vector<1x8x128xf32>
    %12 = vector.shape_cast %11 : vector<1x8x128xf32> to vector<8x128xf32>
    %13 = vector.broadcast %0 : f32 to vector<8x128xf32>
    %14 = arith.mulf %10, %13 : vector<8x128xf32>
    %15 = vector.broadcast %1 : f32 to vector<8x128xf32>
    %16 = arith.mulf %12, %15 : vector<8x128xf32>
    %17 = arith.addf %14, %16 : vector<8x128xf32>
    %18 = vector.broadcast %2 : f32 to vector<8x128xf32>
    %19 = arith.addf %17, %18 : vector<8x128xf32>
    %20 = math.tanh %19 : vector<8x128xf32>
    %21 = vector.broadcast %3 : f32 to vector<8x128xf32>
    %22 = arith.mulf %10, %21 : vector<8x128xf32>
    %23 = vector.broadcast %4 : f32 to vector<8x128xf32>
    %24 = arith.mulf %12, %23 : vector<8x128xf32>
    %25 = arith.addf %22, %24 : vector<8x128xf32>
    %26 = vector.broadcast %5 : f32 to vector<8x128xf32>
    %27 = arith.addf %25, %26 : vector<8x128xf32>
    %28 = math.tanh %27 : vector<8x128xf32>
    %29 = vector.broadcast %6 : f32 to vector<8x128xf32>
    %30 = arith.mulf %20, %29 : vector<8x128xf32>
    %31 = vector.broadcast %7 : f32 to vector<8x128xf32>
    %32 = arith.mulf %28, %31 : vector<8x128xf32>
    %33 = arith.addf %30, %32 : vector<8x128xf32>
    %34 = vector.broadcast %8 : f32 to vector<8x128xf32>
    %35 = arith.addf %33, %34 : vector<8x128xf32>
    %36 = math.tanh %35 : vector<8x128xf32>
    %cst = arith.constant 5.000000e-01 : f32
    %37 = vector.broadcast %cst : f32 to vector<8x128xf32>
    %38 = arith.mulf %37, %36 : vector<8x128xf32>
    %cst_6 = arith.constant 5.000000e-01 : f32
    %39 = vector.broadcast %cst_6 : f32 to vector<8x128xf32>
    %40 = arith.addf %38, %39 : vector<8x128xf32>
    %c0_7 = arith.constant 0 : index
    %c0_8 = arith.constant 0 : index
    %41 = vector.load %arg3[%c0_7, %c0_8] : memref<8x128xf32, #tpu.memory_space<vmem>>, vector<8x128xf32>
    tpu.vector_store %arg3[%c0_7, %c0_8], %40 {strides = array<i32>} : memref<8x128xf32, #tpu.memory_space<vmem>>, vector<8x128xf32>,
    return
  }
  func.func @transform_0(%arg0: i32) -> i32 {
    %c0_i32 = arith.constant 0 : i32
    %c0_i32_0 = arith.constant 0 : i32
    return %c0_i32 : i32
  }
  func.func @transform_1(%arg0: i32) -> (i32, i32, i32) {
    %c0_i32 = arith.constant 0 : i32
    %c0_i32_0 = arith.constant 0 : i32
    %c0_i32_1 = arith.constant 0 : i32
    return %c0_i32, %arg0, %c0_i32_0 : i32, i32, i32
  }
  func.func @transform_2(%arg0: i32) -> (i32, i32) {
    %c0_i32 = arith.constant 0 : i32
    %c0_i32_0 = arith.constant 0 : i32
    return %arg0, %c0_i32 : i32, i32
  }
}

</mosaic_0001>

<bundles_post_ra>
// kernel: tpu_custom_call.1
= control target key start
LH: loop header
LB: loop body
LE: loop exit
PB: predicated region body
PF: predicated region fallthrough
CT: control target
= control target key end

     0   :  { %7 = vsyncpa [#allocation5], 0  ;;  %s227_s0 = inlined_call_operand.hbm [shape: f32[9], index: 0, kind: input, shape index: {}]   ;;  %s228_s1 = inlined_call_operand.hbm [shape: f32[2,8,128], index: 1, kind: input, shape index: {}]   ;;  %s229_s2 = inlined_call_operand.hbm [shape: f32[8,128], index: 2, kind: output, shape index: {}]  }
   0x1   :  { %8 = vsyncpa [#allocation3], 0 }
   0x2   :  { %9 = vsyncpa [#allocation4], 0  ;;  %s111_s11 = scalar_lea.hbm %s227_s0, 16 }
   0x3   :  { %p112_p0 = scmp.ne.s32.totalorder %s227_s0, %s111_s11  ;;  %p115_p1 = scmp.lt.u32.totalorder %s111_s11, %s227_s0 }
   0x5   :  { %p117_p2 = pnand %p115_p1, %p112_p0 }
   0x7   :  { %120 = shalt.err (!%p117_p2)
}
   0x8   :  { %s171_s16 = smov [#allocation2]   ;;  %s172_s19 = smov [#allocation6]  }
   0x9   :  { %17 = dma.hbm_to_smem %s227_s0, 16, %s171_s16, [#allocation5]  }
   0xa   :  { %s23_s20 = sshll.u32 %s172_s19, 4  ;;  %s121_s23 = scalar_lea.hbm %s228_s1, 256  ;;  %s24_s20 = int_to_ptr.vmem [resolvable:$true] %s23_s20 }
   0xb   :  { %p122_p3 = scmp.ne.s32.totalorder %s228_s1, %s121_s23  ;;  %p125_p4 = scmp.lt.u32.totalorder %s121_s23, %s228_s1 }
   0xd   :  { %p127_p5 = pnand %p125_p4, %p122_p3 }
   0xf   :  { %130 = shalt.err (!%p127_p5)
}
  0x10   :  { %s131_s28 = scalar_lea.vmem %s24_s20, 256  ;;  %p136_p7 = scmp.lt.s32.totalorder %s24_s20, %s24_s20 }
  0x11   :  { %p132_p6 = scmp.ne.s32.totalorder %s24_s20, %s131_s28  ;;  %p137_p8 = scmp.lt.s32.totalorder %s131_s28, %s131_s28 }
  0x13   :  { %p138_p9 = por %p137_p8, %p136_p7 }
  0x15   :  { %p139_p10 = pnand %p138_p9, %p132_p6 }
  0x17   :  { %142 = shalt.err (!%p139_p10)
}
  0x18   :  { %s173_s0 = smov 128   ;;  %s174_s29 = smov 8  }
  0x19   :  { %29 = dma.hbm_to_vmem [thread:$0]  %s228_s1, 256, %s24_s20, [#allocation3], %s173_s0, %s173_s0, %s174_s29  }
  0x1a   :  { %165 = dma.done.wait [#allocation5], 16  }
  0x1b   :  { %166 = vsyncadd [#allocation5], 4294967280 }
  0x1c   :  { %167 = dma.done.wait [#allocation3], 256  }
  0x1d   :  { %168 = vsyncadd [#allocation3], 4294967040 }
  0x1e   :  { %36 = sfence }
  0x1f   :  { %s37_s4 = sld [smem:[#allocation2]]  ;;  %s92_s5 = sld [smem:[#allocation2 + $0x1]]  ;;  %v46_v0 = vld [vmem:[#allocation6] sm:$0xff]  ;;  %v48_v1 = vld [vmem:[#allocation6 + $0x8] sm:$0xff] }
  0x20   :  { %s93_s6 = sld [smem:[#allocation2 + $0x2]]  ;;  %s94_s7 = sld [smem:[#allocation2 + $0x3]] }
  0x21   :  { %s95_s8 = sld [smem:[#allocation2 + $0x4]]  ;;  %s96_s9 = sld [smem:[#allocation2 + $0x5]] }
  0x22   :  { %s97_s1 = sld [smem:[#allocation2 + $0x6]]  ;;  %s98_s10 = sld [smem:[#allocation2 + $0x7]] }
  0x23   :  { %s99_s11 = sld [smem:[#allocation2 + $0x8]]  ;;  %s175_s12 = smov [#allocation7]  }
  0x24   :  { %s82_s13 = sshll.u32 %s175_s12, 4  ;;  %s83_s13 = int_to_ptr.vmem [resolvable:$true] %s82_s13 }
  0x25   :  { %v49_v2 = vstv %s37_s4  ;;  %v51_v3 = vstv %s92_s5  ;;  %s143_s14 = scalar_lea.vmem %s83_s13, 128  ;;  %p148_p12 = scmp.lt.s32.totalorder %s83_s13, %s83_s13 }
  0x26   :  { %v50_v4 = vmul.f32 %v49_v2, %v46_v0  ;;  %v52_v5 = vmul.f32 %v51_v3, %v48_v1  ;;  %v57_v6 = vstv %s94_s7  ;;  %v54_v7 = vstv %s93_s6  ;;  %p144_p11 = scmp.ne.s32.totalorder %s83_s13, %s143_s14  ;;  %p149_p13 = scmp.lt.s32.totalorder %s143_s14, %s143_s14 }
  0x27   :  { %v58_v8 = vmul.f32 %v57_v6, %v46_v0  ;;  %v59_v9 = vstv %s95_s8  ;;  %v62_v12 = vstv %s96_s9 }
  0x28   :  { %v53_v10 = vadd.f32 %v52_v5, %v50_v4  ;;  %v60_v11 = vmul.f32 %v59_v9, %v48_v1  ;;  %v65_v16 = vstv %s97_s1  ;;  %v67_v18 = vstv %s98_s10  ;;  %p150_p0 = por %p149_p13, %p148_p12 }
  0x29   :  { %v70_v22 = vstv %s99_s11 }
  0x2a   :  { %v55_v13 = vadd.f32 %v54_v7, %v53_v10  ;;  %v61_v14 = vadd.f32 %v60_v11, %v58_v8  ;;  %p151_p1 = pnand %p150_p0, %p144_p11 }
  0x2c   :  { %105 = vtanh.f32 %v55_v13  ;;  %v63_v15 = vadd.f32 %v62_v12, %v61_v14 }
  0x2e   :  { %107 = vtanh.f32 %v63_v15 }
  0x36   :  { %v106_v17 = vpop.eup %105 }
  0x37   :  { %v66_v19 = vmul.f32 %v106_v17, %v65_v16 }
  0x38   :  { %v108_v20 = vpop.eup %107 }
  0x39   :  { %v68_v21 = vmul.f32 %v108_v20, %v67_v18 }
  0x3b   :  { %v69_v23 = vadd.f32 %v68_v21, %v66_v19 }
  0x3d   :  { %v71_v24 = vadd.f32 %v70_v22, %v69_v23 }
  0x3f   :  { %109 = vtanh.f32 %v71_v24 }
  0x49   :  { %v110_v25 = vpop.eup %109 }
  0x4a   :  { %v73_v26 = vmul.f32 0.5, %v110_v25 }
  0x4c   :  { %v74_v27 = vadd.f32 0.5, %v73_v26 }
  0x4e   :  { %75 = vst [vmem:[#allocation7] sm:$0xff] %v74_v27 }
  0x4f   :  { %154 = shalt.err (!%p151_p1)
}
  0x50   :  { %s155_s17 = scalar_lea.hbm %s229_s2, 128 }
  0x51   :  { %p156_p2 = scmp.ne.s32.totalorder %s229_s2, %s155_s17  ;;  %p159_p3 = scmp.lt.u32.totalorder %s155_s17, %s229_s2 }
  0x53   :  { %p161_p4 = pnand %p159_p3, %p156_p2 }
  0x55   :  { %164 = shalt.err (!%p161_p4)
}
  0x56   :  { %85 = dma.vmem_to_hbm [thread:$0]  %s83_s13, 128, %s229_s2, [#allocation4]  }
  0x57   :  { %169 = dma.done.wait [#allocation4], 128  }
  0x58   :  { %170 = vsyncadd [#allocation4], 4294967168 }
  0x59   :  { %89 = vsyncpa [#allocation3], 1 }
  0x5a   :  { %90 = vsyncpa [#allocation4], 1 }
  0x5b   :  { %91 = vsyncpa [#allocation5], 1 }

</bundles_post_ra>
